<compile_context>
chip_gen: v6e
topology: v6e:2x2x1
jax: 0.10.0
libtpu: 0.0.40
codegen_flags: <defaults>
</compile_context>

<pallas_src>
import functools
import math

import jax
import jax.numpy as jnp
from jax.experimental import pallas as pl
from jax.experimental.pallas import tpu as pltpu


def _temporal_gradient_kernel(x_ref, o_ref, *, fs, time_len):
    x = x_ref[...].astype(jnp.float32)
    cols = x.shape[-1]
    lane_axis = x.ndim - 1  # pltpu.roll requires a non-negative axis index

    # Neighbor values via XLU lane rotation (shift must be non-negative).
    #   roll(x, shift=cols-1)[i] == x[(i+1) % cols]  -> forward neighbor
    #   roll(x, shift=1)[i]      == x[(i-1) % cols]  -> backward neighbor
    right = pltpu.roll(x, shift=cols - 1, axis=lane_axis)
    left = pltpu.roll(x, shift=1, axis=lane_axis)

    # Position within each length-`time_len` chunk (cols may hold several
    # folded chunks).  Wrapped / cross-chunk roll values only appear at the
    # chunk boundaries, which the one-sided formulas overwrite below.
    idx = jax.lax.broadcasted_iota(jnp.int32, (1, cols), 1)
    pos = idx if time_len == cols else idx % time_len
    is_first = pos == 0
    is_last = pos == time_len - 1

    # torch.gradient semantics:
    #   interior : (x[i+1] - x[i-1]) * 0.5 * fs
    #   i == 0   : (x[1]   - x[0])   * fs
    #   i == T-1 : (x[T-1] - x[T-2]) * fs
    # Restructured as one subtract + one multiply (fs folded into the scale).
    plus = jnp.where(is_last, x, right)    # clamped forward neighbor
    minus = jnp.where(is_first, x, left)   # clamped backward neighbor
    scale = jnp.where(is_first | is_last, jnp.float32(fs), jnp.float32(0.5 * fs))

    o_ref[...] = ((plus - minus) * scale).astype(o_ref.dtype)


def _choose_group(rows, time_len):
    """Fold `group` contiguous time-chunks into the lane dim so the last
    (lane) dimension is dense and, whenever possible, a multiple of 128."""
    if rows <= 1 or time_len % 128 == 0:
        return 1
    # Minimal fold factor that makes the folded width a multiple of 128.
    g128 = 128 // math.gcd(time_len, 128)
    target_lanes = 2048
    max_g = max(target_lanes // time_len, 1)
    if g128 * time_len <= 65536:  # keep a folded row <= 256 KiB in f32
        max_g = max(max_g, g128)
    max_g = min(max_g, rows)
    fallback = 1
    for cand in range(max_g, 0, -1):
        if rows % cand:
            continue
        if fallback == 1:
            fallback = cand          # largest divisor of rows within budget
        if (cand * time_len) % 128 == 0:
            return cand              # largest divisor with 128-multiple width
    # No 128-multiple divisor available: still fold when the time axis is
    # narrow so we don't waste 7/8 of every vreg on lane padding.
    return fallback if time_len < 128 else 1


def temporal_gradient(data, fs=100.0):
    """Pallas equivalent of TemporalGradient.forward:
    torch.gradient(data, dim=-1)[0] * fs."""
    orig_shape = data.shape
    time_len = int(orig_shape[-1])
    if time_len < 2:
        raise ValueError(
            "temporal_gradient requires at least 2 samples along the last axis "
            f"(got {time_len}), matching torch.gradient."
        )

    # Integer inputs would truncate on the final cast; promote to f32 instead.
    out_dtype = data.dtype if jnp.issubdtype(data.dtype, jnp.floating) else jnp.float32

    rows = 1
    for d in orig_shape[:-1]:
        rows *= int(d)
    rows = max(rows, 1)

    group = _choose_group(rows, time_len)
    cols = group * time_len
    rows2 = rows // group

    x2d = data.reshape(rows2, cols)

    dtype_bytes = jnp.dtype(data.dtype).itemsize

    # Generation-aware block sizing: larger blocks amortize the ~0.35 us
    # per-grid-step overhead (biggest relative win on v7x's ~3.2 TB/s HBM).
    # With input + output double-buffered (4x block) we stay well inside a
    # 48 MiB scoped-VMEM budget, which also fits v7x's 64 MiB physical VMEM.
    try:
        vmem_capacity = pltpu.get_tpu_info().vmem_capacity_bytes
    except Exception:  # interpret mode / non-TPU backend
        vmem_capacity = 64 * 1024 * 1024
    if vmem_capacity <= 64 * 1024 * 1024:      # v7x-class (64 MiB per TC)
        target_block_bytes = 8 * 1024 * 1024
    else:                                      # v5e / v6e (128 MiB physical)
        target_block_bytes = 6 * 1024 * 1024
    vmem_limit_bytes = 48 * 1024 * 1024

    tr = max(1, target_block_bytes // (cols * dtype_bytes))
    if rows2 > 8:
        # Guarantee >= 2 grid steps so "parallel" can shard the grid across
        # v7x's two TensorCores and the pipeline actually overlaps DMA.
        tr = min(tr, max(8, -(-rows2 // 2)))
    if tr >= rows2:
        tr = rows2                        # full dim: always a legal block extent
    else:
        tr = max(8, (tr // 8) * 8)        # second-minor dim: multiple of 8

    grid = (pl.cdiv(rows2, tr),)

    n_elems = rows2 * cols
    cost = pl.CostEstimate(
        flops=3 * n_elems,
        transcendentals=0,
        bytes_accessed=n_elems * (dtype_bytes + jnp.dtype(out_dtype).itemsize),
    )

    kernel = functools.partial(
        _temporal_gradient_kernel, fs=float(fs), time_len=time_len
    )

    # TODO(synk): add a halo-tiled time-axis path so a single extremely long
    # series (one folded row >> VMEM) does not have to be VMEM-resident.
    out2d = pl.pallas_call(
        kernel,
        out_shape=jax.ShapeDtypeStruct((rows2, cols), out_dtype),
        grid=grid,
        in_specs=[pl.BlockSpec((tr, cols), lambda i: (i, 0))],
        out_specs=pl.BlockSpec((tr, cols), lambda i: (i, 0)),
        compiler_params=pltpu.CompilerParams(
            dimension_semantics=("parallel",),
            vmem_limit_bytes=vmem_limit_bytes,
        ),
        cost_estimate=cost,
    )(x2d)

    return out2d.reshape(orig_shape).astype(out_dtype)


if __name__ == "__main__":
    key = jax.random.PRNGKey(0)
    # small NCHW-ish input; last dim is the temporal axis
    x = jax.random.normal(key, (2, 4, 16, 16), dtype=jnp.float32)
    fs = 100.0

    out = temporal_gradient(x, fs=fs)
    out = jax.block_until_ready(out)

    # reference check against jnp.gradient (same semantics as torch.gradient)
    ref = jnp.gradient(x, axis=-1)
    if isinstance(ref, (list, tuple)):
        ref = ref[0]
    ref = ref * fs

    assert out.shape == x.shape
    assert jnp.allclose(out, ref, atol=1e-4, rtol=1e-4)

    print("KERNEL_OK")
</pallas_src>

<mosaic_0001>
module attributes {stable_mosaic.version = 11 : i64} {
  func.func @_temporal_gradient_kernel(%arg0: i32, %arg1: memref<1x2048xf32, #tpu.memory_space<vmem>>, %arg2: memref<1x2048xf32, #tpu.memory_space<vmem>>) attributes {dimension_semantics = [#tpu.dimension_semantics<parallel>], iteration_bounds = array<i64: 1>, scalar_prefetch = 0 : i64, scratch_operands = 0 : i64, tpu.core_type = #tpu.core_type<tc>, window_params = [{transform_indices = @transform_0, window_bounds = array<i64: 1, 2048>}, {transform_indices = @transform_1, window_bounds = array<i64: 1, 2048>}]} {
    %c0 = arith.constant 0 : index
    %c0_0 = arith.constant 0 : index
    %0 = vector.load %arg1[%c0, %c0_0] : memref<1x2048xf32, #tpu.memory_space<vmem>>, vector<1x2048xf32>
    %c2047_i32 = arith.constant 2047 : i32
    %1 = tpu.dynamic_rotate %0 by %c2047_i32 dim 1 : vector<1x2048xf32>, i32 -> vector<1x2048xf32>
    %c1_i32 = arith.constant 1 : i32
    %2 = tpu.dynamic_rotate %0 by %c1_i32 dim 1 : vector<1x2048xf32>, i32 -> vector<1x2048xf32>
    %3 = tpu.iota {dimensions = array<i32: 1>} : vector<1x2048xi32>
    %c16_i32 = arith.constant 16 : i32
    %c0_i32 = arith.constant 0 : i32
    %4 = arith.cmpi eq, %c16_i32, %c0_i32 : i32
    %c1_i32_1 = arith.constant 1 : i32
    %5 = arith.select %4, %c1_i32_1, %c16_i32 : i32
    %6 = vector.broadcast %5 : i32 to vector<1x2048xi32>
    %7 = arith.remsi %3, %6 : vector<1x2048xi32>
    %c0_i32_2 = arith.constant 0 : i32
    %8 = vector.broadcast %c0_i32_2 : i32 to vector<1x2048xi32>
    %9 = arith.cmpi ne, %7, %8 : vector<1x2048xi32>
    %c0_i32_3 = arith.constant 0 : i32
    %10 = vector.broadcast %c0_i32_3 : i32 to vector<1x2048xi32>
    %11 = arith.cmpi slt, %7, %10 : vector<1x2048xi32>
    %c0_i32_4 = arith.constant 0 : i32
    %12 = arith.cmpi slt, %5, %c0_i32_4 : i32
    %13 = vector.broadcast %12 : i1 to vector<1x2048xi1>
    %14 = vector.broadcast %13 : vector<1x2048xi1> to vector<1x2048xi1>
    %15 = arith.xori %11, %14 : vector<1x2048xi1>
    %16 = arith.andi %15, %9 : vector<1x2048xi1>
    %17 = vector.broadcast %5 : i32 to vector<1x2048xi32>
    %18 = arith.addi %7, %17 : vector<1x2048xi32>
    %19 = arith.select %16, %18, %7 : vector<1x2048xi1>, vector<1x2048xi32>
    %c0_i32_5 = arith.constant 0 : i32
    %20 = vector.broadcast %c0_i32_5 : i32 to vector<1x2048xi32>
    %21 = arith.cmpi eq, %19, %20 : vector<1x2048xi32>
    %c15_i32 = arith.constant 15 : i32
    %22 = vector.broadcast %c15_i32 : i32 to vector<1x2048xi32>
    %23 = arith.cmpi eq, %19, %22 : vector<1x2048xi32>
    %24 = arith.select %23, %0, %1 : vector<1x2048xi1>, vector<1x2048xf32>
    %25 = arith.select %21, %0, %2 : vector<1x2048xi1>, vector<1x2048xf32>
    %26 = arith.ori %21, %23 : vector<1x2048xi1>
    %cst = arith.constant 1.000000e+02 : f32
    %cst_6 = arith.constant 5.000000e+01 : f32
    %27 = vector.broadcast %cst : f32 to vector<1x2048xf32>
    %28 = vector.broadcast %cst_6 : f32 to vector<1x2048xf32>
    %29 = arith.select %26, %27, %28 : vector<1x2048xi1>, vector<1x2048xf32>
    %30 = arith.subf %24, %25 : vector<1x2048xf32>
    %31 = arith.mulf %30, %29 : vector<1x2048xf32>
    %c0_7 = arith.constant 0 : index
    %c0_8 = arith.constant 0 : index
    %32 = vector.load %arg2[%c0_7, %c0_8] : memref<1x2048xf32, #tpu.memory_space<vmem>>, vector<1x2048xf32>
    tpu.vector_store %arg2[%c0_7, %c0_8], %31 {strides = array<i32>} : memref<1x2048xf32, #tpu.memory_space<vmem>>, vector<1x2048xf32>,
    return
  }
  func.func @transform_0(%arg0: i32) -> (i32, i32) {
    %c0_i32 = arith.constant 0 : i32
    %c0_i32_0 = arith.constant 0 : i32
    return %arg0, %c0_i32 : i32, i32
  }
  func.func @transform_1(%arg0: i32) -> (i32, i32) {
    %c0_i32 = arith.constant 0 : i32
    %c0_i32_0 = arith.constant 0 : i32
    return %arg0, %c0_i32 : i32, i32
  }
}

</mosaic_0001>

<bundles_post_ra>
// kernel: tpu_custom_call.1
= control target key start
LH: loop header
LB: loop body
LE: loop exit
PB: predicated region body
PF: predicated region fallthrough
CT: control target
= control target key end

     0   :  { %6 = vsyncpa [#allocation3], 0  ;;  %s1423_s0 = inlined_call_operand.hbm [shape: f32[1,2048], index: 0, kind: input, shape index: {}]   ;;  %s1424_s1 = inlined_call_operand.hbm [shape: f32[1,2048], index: 1, kind: output, shape index: {}]  }
   0x1   :  { %7 = vsyncpa [#allocation4], 0  ;;  %s723_s6 = smov [#allocation2]  }
   0x2   :  { %s14_s7 = sshll.u32 %s723_s6, 4  ;;  %s15_s7 = int_to_ptr.vmem [resolvable:$true] %s14_s7 }
   0x3   :  { %s687_s8 = scalar_lea.vmem %s15_s7, 256  ;;  %p692_p1 = scmp.lt.s32.totalorder %s15_s7, %s15_s7 }
   0x4   :  { %p688_p0 = scmp.ne.s32.totalorder %s15_s7, %s687_s8  ;;  %p693_p2 = scmp.lt.s32.totalorder %s687_s8, %s687_s8 }
   0x6   :  { %p694_p3 = por %p693_p2, %p692_p1 }
   0x8   :  { %p695_p4 = pnand %p694_p3, %p688_p0 }
   0xa   :  { %698 = shalt.err (!%p695_p4)
}
   0xb   :  { %17 = dma.hbm_to_vmem [thread:$0]  %s1423_s0, 256, %s15_s7, [#allocation3]  }
   0xc   :  { %719 = dma.done.wait [#allocation3], 256  }
   0xd   :  { %720 = vsyncadd [#allocation3], 4294967040  ;;  %v25_v0 = vlaneseq  ;;  %v21_v6 = vld [vmem:[#allocation2] sm:$0xff]  ;;  %s724_s0 = smov 127   ;;  %v22_v19 = vld [vmem:[#allocation2 + $0x8] sm:$0xff]  ;;  %s725_s11 = smov 1  }
   0xe   :  { %v1509_v52 = vmov 0  ;;  %v1512_v57 = vmov 0  ;;  %v1515_v58 = vmov 0  ;;  %v1517_v61 = vmov 0  ;;  %s728_s12 = smov [#allocation5]  }
   0xf   :  { %v743_v1 = vshrl.u32 %v25_v0, 7  ;;  %v842_v32 = vand.u32 127, %v25_v0  ;;  %v1519_v62 = vmov 0  ;;  %s664_s13 = sshll.u32 %s728_s12, 4  ;;  %s665_s13 = int_to_ptr.vmem [resolvable:$true] %s664_s13 }
  0x10   :  { %s699_s14 = scalar_lea.vmem %s665_s13, 256  ;;  %p704_p6 = scmp.lt.s32.totalorder %s665_s13, %s665_s13 }
  0x11   :  { %v35_v2 = vsub.s32 2, %v743_v1  ;;  %v27_v3 = vsub.s32 0, %v743_v1  ;;  %v39_v4 = vsub.s32 3, %v743_v1  ;;  %v31_v5 = vsub.s32 1, %v743_v1  ;;  %p700_p5 = scmp.ne.s32.totalorder %s665_s13, %s699_s14  ;;  %p705_p7 = scmp.lt.s32.totalorder %s699_s14, %s699_s14 }
  0x12   :  { %v47_v11 = vsub.s32 5, %v743_v1  ;;  %v43_v12 = vsub.s32 4, %v743_v1  ;;  %v55_v15 = vsub.s32 7, %v743_v1  ;;  %v51_v16 = vsub.s32 6, %v743_v1 }
  0x13   :  { %v749_v7 = vrot.slane %v21_v6, %v35_v2  ;;  %v751_v8 = vrot.slane %v21_v6, %v27_v3  ;;  %v757_v9 = vrot.slane %v21_v6, %v39_v4  ;;  %v759_v10 = vrot.slane %v21_v6, %v31_v5  ;;  %p706_p8 = por %p705_p7, %p704_p6 }
  0x14   :  { %v767_v13 = vrot.slane %v21_v6, %v47_v11  ;;  %v769_v14 = vrot.slane %v21_v6, %v43_v12  ;;  %v777_v17 = vrot.slane %v21_v6, %v55_v15  ;;  %v779_v18 = vrot.slane %v21_v6, %v51_v16 }
  0x15   :  { %109 = vrot.lane.b32.xlu1 %v749_v7, %s724_s0  ;;  %105 = vrot.lane.b32.xlu0 %v751_v8, %s724_s0  ;;  %1499 = vst [vmem:[#allocation8_spill] sm:$0xff] %v759_v10  ;;  %v785_v20 = vrot.slane %v22_v19, %v31_v5  ;;  %v787_v21 = vrot.slane %v22_v19, %v27_v3  ;;  %v206_v35 = vadd.s32 256, %v842_v32  ;;  %v205_v36 = vadd.s32 128, %v842_v32  ;;  %p707_p9 = pnand %p706_p8, %p700_p5 }
  0x16   :  { %v793_v22 = vrot.slane %v22_v19, %v39_v4  ;;  %v795_v23 = vrot.slane %v22_v19, %v35_v2  ;;  %v801_v24 = vrot.slane %v22_v19, %v47_v11  ;;  %v803_v25 = vrot.slane %v22_v19, %v43_v12 }
  0x17   :  { %1500 = vst [vmem:[#allocation9_spill] sm:$0xff] %v785_v20  ;;  %v809_v26 = vrot.slane %v22_v19, %v55_v15  ;;  %v811_v27 = vrot.slane %v22_v19, %v51_v16  ;;  %v207_v39 = vadd.s32 384, %v842_v32  ;;  %v208_v40 = vadd.s32 512, %v842_v32 }
  0x18   :  { %1501 = vst [vmem:[#allocation10_spill] sm:$0xff] %v793_v22  ;;  %1502 = vst [vmem:[#allocation11_spill] sm:$0xff] %v795_v23  ;;  %v238_v41 = vand.u32 15, %v206_v35  ;;  %v231_v42 = vand.u32 15, %v205_v36  ;;  %v209_v43 = vadd.s32 640, %v842_v32  ;;  %v210_v44 = vadd.s32 768, %v842_v32 }
  0x19   :  { %111 = vrot.lane.b32.xlu1 %v757_v9, %s724_s0  ;;  %107 = vrot.lane.b32.xlu0 %v759_v10, %s724_s0  ;;  %1503 = vst [vmem:[#allocation12_spill] sm:$0xff] %v801_v24  ;;  %1504 = vst [vmem:[#allocation13_spill] sm:$0xff] %v803_v25  ;;  %v245_v47 = vand.u32 15, %v207_v39  ;;  %v252_v48 = vand.u32 15, %v208_v40  ;;  %v211_v49 = vadd.s32 896, %v842_v32  ;;  %v212_v59 = vadd.s32 1024, %v842_v32 }
  0x1a   :  { %1505 = vst [vmem:[#allocation14_spill] sm:$0xff] %v809_v26  ;;  %1506 = vst [vmem:[#allocation15_spill] sm:$0xff] %v811_v27  ;;  %vm863_vm0 = vcmp.eq.s32.totalorder %v238_v41, 15  ;;  %vm868_vm1 = vcmp.eq.s32.totalorder %v231_v42, 15  ;;  %v259_v53 = vand.u32 15, %v209_v43  ;;  %v266_v54 = vand.u32 15, %v210_v44 }
  0x1b   :  { %v1510_v52 = vsel %vm868_vm1, 4294967295, %v1509_v52  ;;  %vm876_vm2 = vcmp.eq.s32.totalorder %v231_v42, 0  ;;  %vm880_vm3 = vcmp.eq.s32.totalorder %v245_v47, 15  ;;  %v213_v60 = vadd.s32 1152, %v842_v32 }
  0x1c   :  { %1511 = vst [vmem:[#allocation16_spill] sm:$0xff] %v1510_v52  ;;  %v1513_v57 = vsel %vm876_vm2, 4294967295, %v1512_v57  ;;  %v1516_v58 = vsel %vm880_vm3, 4294967295, %v1515_v58  ;;  %vm886_vm4 = vcmp.eq.s32.totalorder %v238_v41, 0  ;;  %vm890_vm5 = vcmp.eq.s32.totalorder %v252_v48, 15 }
  0x1d   :  { %115 = vrot.lane.b32.xlu1 %v767_v13, %s724_s0  ;;  %113 = vrot.lane.b32.xlu0 %v769_v14, %s724_s0  ;;  %1514 = vst [vmem:[#allocation17_spill] sm:$0xff] %v1513_v57  ;;  %v1518_v61 = vsel %vm886_vm4, 4294967295, %v1517_v61  ;;  %v1520_v62 = vsel %vm890_vm5, 4294967295, %v1519_v62  ;;  %v273_v63 = vand.u32 15, %v211_v49  ;;  %v214_v0 = vadd.s32 1280, %v842_v32 }
  0x1e   :  { %vm895_vm6 = vcmp.eq.s32.totalorder %v245_v47, 0  ;;  %v1521_v2 = vmov 0  ;;  %v215_v3 = vadd.s32 1408, %v842_v32  ;;  %v216_v4 = vadd.s32 1536, %v842_v32 }
  0x1f   :  { %v1522_v2 = vsel %vm895_vm6, 4294967295, %v1521_v2  ;;  %vm905_vm8 = vcmp.eq.s32.totalorder %v252_v48, 0  ;;  %v1523_v5 = vmov 0  ;;  %v914_v12 = vadd.s32 1920, %v842_v32 }
  0x20   :  { %v1524_v5 = vsel %vm905_vm8, 4294967295, %v1523_v5  ;;  %v217_v15 = vadd.s32 1664, %v842_v32  ;;  %v218_v16 = vadd.s32 1792, %v842_v32  ;;  %vm922_vm10 = vcmp.eq.s32.totalorder %v259_v53, 0 }
  0x21   :  { %119 = vrot.lane.b32.xlu1 %v777_v17, %s724_s0  ;;  %117 = vrot.lane.b32.xlu0 %v779_v18, %s724_s0  ;;  %v1527_v19 = vmov 0  ;;  %vm926_vm11 = vcmp.eq.s32.totalorder %v259_v53, 15  ;;  %v1529_v35 = vmov 0  ;;  %vm930_vm12 = vcmp.eq.s32.totalorder %v266_v54, 15 }
  0x22   :  { %v1528_v19 = vsel %vm922_vm10, 4294967295, %v1527_v19  ;;  %v1530_v35 = vsel %vm926_vm11, 4294967295, %v1529_v35  ;;  %v1531_v36 = vmov 0  ;;  %v280_v39 = vand.u32 15, %v212_v59 }
  0x23   :  { %v1532_v36 = vsel %vm930_vm12, 4294967295, %v1531_v36  ;;  %vm938_vm14 = vcmp.eq.s32.totalorder %v266_v54, 0  ;;  %v1533_v40 = vmov 0  ;;  %vm942_vm15 = vcmp.eq.s32.totalorder %v273_v63, 15 }
  0x24   :  { %v1534_v40 = vsel %vm938_vm14, 4294967295, %v1533_v40  ;;  %v1535_v41 = vmov 0  ;;  %v287_v42 = vand.u32 15, %v213_v60  ;;  %v726_v43 = vmov 1966171168  }
  0x25   :  { %123 = vrot.lane.b32.xlu1 %v785_v20, %s724_s0  ;;  %121 = vrot.lane.b32.xlu0 %v787_v21, %s724_s0  ;;  %v1536_v41 = vsel %vm942_vm15, 4294967295, %v1535_v41  ;;  %v561_v44 = vunpack.c.l.s4 %v726_v43  ;;  %vm950_vm7 = vcmp.eq.s32.totalorder %v273_v63, 0  ;;  %v1537_v47 = vmov 0 }
  0x26   :  { %v1538_v47 = vsel %vm950_vm7, 4294967295, %v1537_v47  ;;  %v294_v48 = vand.u32 15, %v214_v0  ;;  %v301_v49 = vand.u32 15, %v215_v3  ;;  %v308_v53 = vand.u32 15, %v216_v4 }
  0x27   :  { %vm958_vm3 = vcmp.eq.s32.totalorder %v280_v39, 0  ;;  %v1539_v54 = vmov 0  ;;  %v329_v59 = vand.u32 15, %v914_v12  ;;  %v315_v63 = vand.u32 15, %v217_v15 }
  0x28   :  { %v1540_v54 = vsel %vm958_vm3, 4294967295, %v1539_v54  ;;  %v322_v43 = vand.u32 15, %v218_v16  ;;  %vm971_vm5 = vcmp.eq.s32.totalorder %v287_v42, 0  ;;  %v1543_v0 = vmov 0 }
  0x29   :  { %127 = vrot.lane.b32.xlu1 %v793_v22, %s724_s0  ;;  %125 = vrot.lane.b32.xlu0 %v795_v23, %s724_s0  ;;  %v1544_v0 = vsel %vm971_vm5, 4294967295, %v1543_v0  ;;  %v1545_v3 = vand.u32 15, %v842_v32  ;;  %v1546_v4 = vmov 0  ;;  %vm982_vm10 = vcmp.eq.s32.totalorder %v280_v39, 15 }
  0x2a   :  { %v1548_v12 = vmov 0  ;;  %vm990_vm12 = vcmp.eq.s32.totalorder %v294_v48, 0  ;;  %v1550_v15 = vmov 0  ;;  %vm994_vm13 = vcmp.eq.s32.totalorder %v287_v42, 15 }
  0x2b   :  { %vm978_vm11 = vcmp.eq.s32.totalorder %v1545_v3, 15  ;;  %v1549_v12 = vsel %vm982_vm10, 4294967295, %v1548_v12  ;;  %v1551_v15 = vsel %vm990_vm12, 4294967295, %v1550_v15  ;;  %v1553_v16 = vmov 0 }
  0x2c   :  { %v1547_v4 = vsel %vm978_vm11, 4294967295, %v1546_v4  ;;  %1552 = vst [vmem:[#allocation22_spill] sm:$0xff] %v1551_v15  ;;  %v1554_v16 = vsel %vm994_vm13, 4294967295, %v1553_v16  ;;  %v562_v3 = vunpack.c.0.s8 %v561_v44  ;;  %vm1002_vm14 = vcmp.eq.s32.totalorder %v301_v49, 0  ;;  %vm1579_vm11 = vmor %vm886_vm4, %vm863_vm0 }
  0x2d   :  { %131 = vrot.lane.b32.xlu1 %v801_v24, %s724_s0  ;;  %129 = vrot.lane.b32.xlu0 %v803_v25, %s724_s0  ;;  %v1555_v39 = vmov 0  ;;  %vm1006_vm8 = vcmp.eq.s32.totalorder %v294_v48, 15  ;;  %vm1010_vm9 = vcmp.eq.s32.totalorder %v301_v49, 15  ;;  %vm1014_vm15 = vcmp.eq.s32.totalorder %v308_v53, 15 }
  0x2e   :  { %v1556_v39 = vsel %vm1002_vm14, 4294967295, %v1555_v39  ;;  %v1563_v42 = vmov 0  ;;  %vm1022_vm10 = vcmp.eq.s32.totalorder %v308_v53, 0  ;;  %v1565_v44 = vmov 0 }
  0x2f   :  { %1557 = vst [vmem:[#allocation23_spill] sm:$0xff] %v1556_v39  ;;  %v1564_v42 = vsel %vm1014_vm15, 4294967295, %v1563_v42  ;;  %v1566_v44 = vsel %vm1022_vm10, 4294967295, %v1565_v44  ;;  %vm1026_vm3 = vcmp.eq.s32.totalorder %v329_v59, 15  ;;  %v1567_v48 = vmov 0 }
  0x30   :  { %v1568_v48 = vsel %vm1026_vm3, 4294967295, %v1567_v48  ;;  %vm1030_vm7 = vcmp.eq.s32.totalorder %v315_v63, 15  ;;  %v1569_v49 = vmov 0  ;;  %vm1034_vm14 = vcmp.eq.s32.totalorder %v322_v43, 15 }
  0x31   :  { %135 = vrot.lane.b32.xlu1 %v809_v26, %s724_s0  ;;  %133 = vrot.lane.b32.xlu0 %v811_v27, %s724_s0  ;;  %v1570_v49 = vsel %vm1030_vm7, 4294967295, %v1569_v49  ;;  %vm1047_vm3 = vcmp.eq.s32.totalorder %v315_v63, 0  ;;  %vm1580_vm13 = vnez %v1516_v58  ;;  %vm1582_vm12 = vnez %v1556_v39 }
  0x32   :  { %v1583_v57 = vand.u32 15, %v842_v32  ;;  %vm1601_vm4 = vnez %v1538_v47 }
  0x35   :  { %158 = vrot.lane.b32.xlu1 %v759_v10, %s725_s11  ;;  %156 = vrot.lane.b32.xlu0 %v751_v8, %s725_s11 }
  0x39   :  { %162 = vrot.lane.b32.xlu1 %v757_v9, %s725_s11  ;;  %160 = vrot.lane.b32.xlu0 %v749_v7, %s725_s11 }
  0x3d   :  { %166 = vrot.lane.b32.xlu1 %v767_v13, %s725_s11  ;;  %164 = vrot.lane.b32.xlu0 %v769_v14, %s725_s11 }
  0x41   :  { %170 = vrot.lane.b32.xlu1 %v777_v17, %s725_s11  ;;  %168 = vrot.lane.b32.xlu0 %v779_v18, %s725_s11 }
  0x45   :  { %174 = vrot.lane.b32.xlu1 %v785_v20, %s725_s11  ;;  %172 = vrot.lane.b32.xlu0 %v787_v21, %s725_s11 }
  0x49   :  { %178 = vrot.lane.b32.xlu1 %v793_v22, %s725_s11  ;;  %176 = vrot.lane.b32.xlu0 %v795_v23, %s725_s11 }
  0x4d   :  { %182 = vrot.lane.b32.xlu1 %v801_v24, %s725_s11  ;;  %180 = vrot.lane.b32.xlu0 %v803_v25, %s725_s11  ;;  %v1571_v25 = vmov 0 }
  0x4e   :  { %v1572_v25 = vsel %vm1034_vm14, 4294967295, %v1571_v25  ;;  %vm1577_vm14 = vmor %vm876_vm2, %vm868_vm1  ;;  %vm1587_vm2 = vnez %v1520_v62 }
  0x4f   :  { %1573 = vst [vmem:[#allocation25_spill] sm:$0xff] %v1572_v25 }
  0x51   :  { %186 = vrot.lane.b32.xlu1 %v809_v26, %s725_s11  ;;  %184 = vrot.lane.b32.xlu0 %v811_v27, %s725_s11  ;;  %v1558_v27 = vmov 0  ;;  %v1560_v26 = vmov 0 }
  0x52   :  { %v1559_v27 = vsel %vm1006_vm8, 4294967295, %v1558_v27  ;;  %v1561_v26 = vsel %vm1010_vm9, 4294967295, %v1560_v26  ;;  %vm1581_vm8 = vmor %vm895_vm6, %vm1580_vm13  ;;  %vm1590_vm6 = vnez %v1530_v35  ;;  %vm1095_vm13 = vcmp.eq.s32.totalorder %v322_v43, 0 }
  0x53   :  { %1562 = vst [vmem:[#allocation24_spill] sm:$0xff] %v1561_v26  ;;  %v1622_v26 = vmov 0 }
  0x87   :  { %v833_v28 = vpop.permute.xlu1 %109  ;;  %v835_v29 = vpop.permute.xlu0 %105 }
  0x8b   :  { %v837_v30 = vpop.permute.xlu1 %111  ;;  %v839_v31 = vpop.permute.xlu0 %107 }
  0x8f   :  { %v844_v33 = vpop.permute.xlu1 %115  ;;  %v846_v34 = vpop.permute.xlu0 %113 }
  0x93   :  { %v850_v37 = vpop.permute.xlu1 %119  ;;  %v852_v38 = vpop.permute.xlu0 %117 }
  0x97   :  { %v858_v45 = vpop.permute.xlu1 %123  ;;  %v860_v46 = vpop.permute.xlu0 %121 }
  0x9b   :  { %v872_v55 = vpop.permute.xlu1 %127  ;;  %v874_v56 = vpop.permute.xlu0 %125 }
  0x9f   :  { %v909_v6 = vpop.permute.xlu1 %131  ;;  %v911_v11 = vpop.permute.xlu0 %129 }
  0xa0   :  { %1525 = vst [vmem:[#allocation18_spill] sm:$0xff] %v909_v6  ;;  %1526 = vst [vmem:[#allocation19_spill] sm:$0xff] %v911_v11  ;;  %v1079_v6 = vsub.s32 %v562_v3, %v743_v1  ;;  %v1592_v1 = vmov 0 }
  0xa1   :  { %v1593_v1 = vsel %vm1095_vm13, 4294967295, %v1592_v1 }
  0xa2   :  { %1594 = vst [vmem:[#allocation28_spill] sm:$0xff] %v1593_v1 }
  0xa3   :  { %v963_v60 = vpop.permute.xlu1 %135  ;;  %v965_v51 = vpop.permute.xlu0 %133 }
  0xa4   :  { %1541 = vst [vmem:[#allocation20_spill] sm:$0xff] %v963_v60  ;;  %1542 = vst [vmem:[#allocation21_spill] sm:$0xff] %v965_v51  ;;  %v727_v51 = vmov 50.0  }
  0xa5   :  { %v1056_v22 = vsel %vm1577_vm14, 100.0, %v727_v51  ;;  %v495_v63 = vsel %vm1581_vm8, 100.0, %v727_v51  ;;  %vm1074_vm14 = vcmp.eq.s32.totalorder %v1583_v57, 0  ;;  %vm1589_vm8 = vnez %v1528_v19 }
  0xa6   :  { %1578 = vst [vmem:[#allocation27_spill] sm:$0xff] %v1056_v22  ;;  %vm1591_vm5 = vmor %vm1589_vm8, %vm1590_vm6  ;;  %vm1598_vm8 = vnez %v1532_v36 }
  0xa7   :  { %v1038_v24 = vpop.permute.xlu1 %158  ;;  %v1041_v53 = vpop.permute.xlu0 %156  ;;  %v497_v11 = vsel %vm1591_vm5, 100.0, %v727_v51  ;;  %vm1597_vm5 = vnez %v1534_v40 }
  0xa8   :  { %1574 = vst [vmem:[#allocation26_spill] sm:$0xff] %v1041_v53  ;;  %v494_v53 = vsel %vm1579_vm11, 100.0, %v727_v51  ;;  %vm1586_vm11 = vnez %v1524_v5  ;;  %vm1599_vm6 = vmor %vm1597_vm5, %vm1598_vm8  ;;  %vm1606_vm5 = vnez %v1549_v12  ;;  %vm1609_vm8 = vnez %v1544_v0  ;;  %v1655_v12 = vld [vmem:[#allocation9_spill] sm:$0xff] }
  0xa9   :  { %vm1588_vm1 = vmor %vm1586_vm11, %vm1587_vm2  ;;  %vm1595_vm11 = vcmp.lt.s32.totalorder %v842_v32, 127  ;;  %v1112_v52 = vsel %vm1599_vm6, 100.0, %v727_v51  ;;  %vm1602_vm2 = vnez %v1536_v41 }
  0xaa   :  { %v496_v23 = vsel %vm1588_vm1, 100.0, %v727_v51  ;;  %v152_v57 = vsel %vm1595_vm11, %v833_v28, %v837_v30  ;;  %vm1596_vm1 = vmmov %vm1595_vm11  ;;  %1600 = vst [vmem:[#allocation29_spill] sm:$0xff] %v1112_v52  ;;  %vm1613_vm11 = vnez %v1559_v27 }
  0xab   :  { %v151_v3 = vsel %vm1596_vm1, %v837_v30, %v846_v34  ;;  %vm1603_vm15 = vmor %vm1601_vm4, %vm1602_vm2  ;;  %v163_v30 = vpop.permute.xlu1 %162  ;;  %v161_v10 = vpop.permute.xlu0 %160  ;;  %vm1605_vm1 = vnez %v1540_v54  ;;  %vm1610_vm4 = vnez %v1554_v16  ;;  %vm1612_vm2 = vnez %v1551_v15 }
  0xac   :  { %v1119_v43 = vsel %vm1603_vm15, 100.0, %v727_v51  ;;  %vm1607_vm6 = vmor %vm1605_vm1, %vm1606_vm5  ;;  %vm1618_vm1 = vnez %v1547_v4 }
  0xad   :  { %1604 = vst [vmem:[#allocation30_spill] sm:$0xff] %v1119_v43  ;;  %v1130_v52 = vsel %vm1607_vm6, 100.0, %v727_v51  ;;  %vm1611_vm15 = vmor %vm1609_vm8, %vm1610_vm4  ;;  %vm1619_vm8 = vcmp.lt.s32.totalorder %v842_v32, 127 }
  0xae   :  { %1608 = vst [vmem:[#allocation31_spill] sm:$0xff] %v1130_v52  ;;  %v1137_v20 = vsel %vm1611_vm15, 100.0, %v727_v51  ;;  %vm1614_vm7 = vmor %vm1612_vm2, %vm1613_vm11  ;;  %v150_v15 = vsel %vm1619_vm8, %v846_v34, %v844_v33  ;;  %v446_v34 = vsel %vm863_vm0, %v749_v7, %v152_v57  ;;  %vm1625_vm8 = vnez %v1516_v58 }
  0xaf   :  { %v1144_v43 = vsel %vm1614_vm7, 100.0, %v727_v51  ;;  %vm1616_vm6 = vmor %vm1582_vm12, %vm1010_vm9  ;;  %vm1620_vm7 = vcmp.lt.s32.totalorder %v842_v32, 1  ;;  %vm1166_vm12 = vcmp.eq.s32.totalorder %v329_v59, 0  ;;  %vm1629_vm0 = vnez %v1564_v42 }
  0xb0   :  { %1615 = vst [vmem:[#allocation32_spill] sm:$0xff] %v1144_v43  ;;  %v1151_v52 = vsel %vm1616_vm6, 100.0, %v727_v51  ;;  %v201_v43 = vsel %vm1620_vm7, %v161_v10, %v163_v30  ;;  %vm1621_vm2 = vmmov %vm1620_vm7  ;;  %v1623_v26 = vsel %vm1166_vm12, 4294967295, %v1622_v26  ;;  %vm1624_vm6 = vnez %v1572_v25 }
  0xb1   :  { %1617 = vst [vmem:[#allocation33_spill] sm:$0xff] %v1151_v52  ;;  %v202_v39 = vsel %vm1621_vm2, %v1038_v24, %v161_v10  ;;  %vm490_vm15 = vmor %vm1095_vm13, %vm1624_vm6  ;;  %v447_v52 = vsel %vm1625_vm8, %v757_v9, %v151_v3  ;;  %vm1626_vm2 = vnez %v1518_v61  ;;  %vm1627_vm7 = vnez %v1522_v2  ;;  %v167_v61 = vpop.permute.xlu1 %166 }
  0xb2   :  { %v462_v10 = vsel %vm1626_vm2, %v749_v7, %v202_v39  ;;  %v463_v59 = vsel %vm1627_vm7, %v757_v9, %v201_v43  ;;  %vm1628_vm13 = vcmp.lt.s32.totalorder %v842_v32, 127  ;;  %vm1630_vm8 = vmor %vm1022_vm10, %vm1629_vm0  ;;  %vm1631_vm2 = vnez %v1520_v62  ;;  %v165_v9 = vpop.permute.xlu0 %164 }
  0xb3   :  { %v149_v1 = vsel %vm1628_vm13, %v844_v33, %v852_v38  ;;  %v510_v25 = vsub.f32 %v446_v34, %v462_v10  ;;  %v511_v50 = vsub.f32 %v447_v52, %v463_v59  ;;  %v1195_v58 = vsel %vm1630_vm8, 100.0, %v727_v51  ;;  %vm1634_vm6 = vmor %vm1074_vm14, %vm1618_vm1 }
  0xb4   :  { %v448_v7 = vsel %vm1631_vm2, %v769_v14, %v150_v15  ;;  %vm1632_vm7 = vnez %v1570_v49  ;;  %v1212_v52 = vsel %vm1634_vm6, 100.0, %v727_v51  ;;  %v1214_v2 = vsel %vm490_vm15, 100.0, %v727_v51 }
  0xb5   :  { %vm1633_vm13 = vmor %vm1047_vm3, %vm1632_vm7  ;;  %v526_v62 = vmul.f32 %v510_v25, %v494_v53  ;;  %v527_v15 = vmul.f32 %v511_v50, %v495_v63  ;;  %vm1635_vm8 = vcmp.lt.s32.totalorder %v842_v32, 1  ;;  %vm1638_vm6 = vcmp.lt.s32.totalorder %v842_v32, 127 }
  0xb6   :  { %v1205_v33 = vsel %vm1633_vm13, 100.0, %v727_v51  ;;  %v199_v39 = vsel %vm1635_vm8, %v165_v9, %v167_v61  ;;  %vm1636_vm2 = vmmov %vm1635_vm8  ;;  %vm1637_vm13 = vnez %v1568_v48  ;;  %v148_v3 = vsel %vm1638_vm6, %v852_v38, %v850_v37 }
  0xb7   :  { %v200_v57 = vsel %vm1636_vm2, %v163_v30, %v165_v9  ;;  %vm491_vm10 = vmor %vm1166_vm12, %vm1637_vm13  ;;  %vm1639_vm15 = vnez %v1530_v35  ;;  %vm1640_vm8 = vnez %v1524_v5  ;;  %vm1641_vm2 = vnez %v1528_v19  ;;  %v169_v5 = vpop.permute.xlu0 %168 }
  0xb8   :  { %v449_v25 = vsel %vm1639_vm15, %v767_v13, %v149_v1  ;;  %v464_v53 = vsel %vm1640_vm8, %v769_v14, %v200_v57  ;;  %v465_v63 = vsel %vm1641_vm2, %v767_v13, %v199_v39  ;;  %vm1642_vm12 = vmmov %vm1638_vm6  ;;  %v557_v30 = vcombine.low %v526_v62, %v527_v15 }
  0xb9   :  { %v147_v43 = vsel %vm1642_vm12, %v850_v37, %v860_v46  ;;  %v512_v34 = vsub.f32 %v448_v7, %v464_v53  ;;  %v513_v38 = vsub.f32 %v449_v25, %v465_v63  ;;  %v1245_v35 = vsel %vm1638_vm6, %v839_v31, %v833_v28  ;;  %vm1643_vm15 = vmmov %vm1638_vm6  ;;  %v171_v37 = vpop.permute.xlu1 %170  ;;  %v1659_v63 = vld [vmem:[#allocation8_spill] sm:$0xff] }
  0xba   :  { %v1251_v14 = vsel %vm1643_vm15, %v835_v29, %v839_v31  ;;  %vm1644_vm8 = vmmov %vm1638_vm6  ;;  %v1257_v19 = vsel %vm491_vm10, 100.0, %v727_v51  ;;  %v1260_v1 = vrot.slane %v557_v30, %v1079_v6  ;;  %vm1645_vm12 = vcmp.lt.s32.totalorder %v842_v32, 1  ;;  %v1701_v32 = vld [vmem:[#allocation27_spill] sm:$0xff] }
  0xbb   :  { %v146_v13 = vsel %vm1644_vm8, %v860_v46, %v858_v45  ;;  %v528_v28 = vmul.f32 %v512_v34, %v496_v23  ;;  %v529_v10 = vmul.f32 %v513_v38, %v497_v11  ;;  %v197_v59 = vsel %vm1645_vm12, %v169_v5, %v171_v37  ;;  %vm1648_vm15 = vmmov %vm1645_vm12  ;;  %v173_v9 = vpop.permute.xlu0 %172  ;;  %v1662_v34 = vld [vmem:[#allocation19_spill] sm:$0xff] }
  0xbc   :  { %vm1646_vm2 = vnez %v1532_v36  ;;  %vm1647_vm6 = vnez %v1536_v41  ;;  %v198_v51 = vsel %vm1648_vm15, %v167_v61, %v169_v5  ;;  %vm1649_vm10 = vnez %v1538_v47  ;;  %v1667_v5 = vld [vmem:[#allocation26_spill] sm:$0xff] }
  0xbd   :  { %v450_v31 = vsel %vm1646_vm2, %v779_v18, %v148_v3  ;;  %v451_v46 = vsel %vm1647_vm6, %v777_v17, %v147_v43  ;;  %v467_v50 = vsel %vm1649_vm10, %v777_v17, %v197_v59  ;;  %v145_v23 = vsel %vm1644_vm8, %v858_v45, %v874_v56  ;;  %vm1651_vm2 = vmmov %vm1644_vm8  ;;  %v175_v61 = vpop.permute.xlu1 %174  ;;  %v1656_v3 = vld [vmem:[#allocation29_spill] sm:$0xff]  ;;  %v1660_v43 = vld [vmem:[#allocation16_spill] sm:$0xff] }
  0xbe   :  { %v558_v11 = vcombine.low %v528_v28, %v529_v10  ;;  %vm1650_vm12 = vnez %v1534_v40  ;;  %v515_v7 = vsub.f32 %v451_v46, %v467_v50  ;;  %v444_v41 = vsel %vm1618_vm1, %v751_v8, %v1251_v14  ;;  %v1652_v40 = vld [vmem:[#allocation30_spill] sm:$0xff]  ;;  %vm1653_vm6 = vmmov %vm1648_vm15 }
  0xbf   :  { %v466_v36 = vsel %vm1650_vm12, %v779_v18, %v198_v51  ;;  %v452_v17 = vsel %vm1606_vm5, %v787_v21, %v146_v13  ;;  %v144_v45 = vsel %vm1651_vm2, %v874_v56, %v872_v55  ;;  %v195_v15 = vsel %vm1653_vm6, %v173_v9, %v175_v61  ;;  %vm1654_vm15 = vmmov %vm1653_vm6  ;;  %v177_v59 = vpop.permute.xlu0 %176  ;;  %v1672_v50 = vld [vmem:[#allocation10_spill] sm:$0xff] }
  0xc0   :  { %v514_v47 = vsub.f32 %v450_v31, %v466_v36  ;;  %v580_v18 = vrot.slane %v558_v11, %v1079_v6  ;;  %v531_v62 = vmul.f32 %v515_v7, %v1652_v40  ;;  %v196_v39 = vsel %vm1654_vm15, %v171_v37, %v173_v9  ;;  %vm1663_vm12 = vmmov %vm1651_vm2  ;;  %v1664_v37 = vld [vmem:[#allocation11_spill] sm:$0xff] }
  0xc1   :  { %v453_v57 = vsel %vm1610_vm4, %v1655_v12, %v145_v23  ;;  %vm1657_vm5 = vnez %v1540_v54  ;;  %vm1658_vm10 = vnez %v1544_v0  ;;  %vm1661_vm8 = vnez %v1660_v43  ;;  %v1665_v54 = vld [vmem:[#allocation18_spill] sm:$0xff]  ;;  %vm1666_vm4 = vmmov %vm1651_vm2  ;;  %v179_v10 = vpop.permute.xlu1 %178  ;;  %v1685_v43 = vld [vmem:[#allocation32_spill] sm:$0xff] }
  0xc2   :  { %v530_v25 = vmul.f32 %v514_v47, %v1656_v3  ;;  %v468_v56 = vsel %vm1657_vm5, %v787_v21, %v196_v39  ;;  %v469_v53 = vsel %vm1658_vm10, %v1655_v12, %v195_v15  ;;  %v445_v30 = vsel %vm1661_vm8, %v1659_v63, %v1245_v35  ;;  %vm1668_vm2 = vmmov %vm1653_vm6  ;;  %v1683_v12 = vld [vmem:[#allocation17_spill] sm:$0xff] }
  0xc3   :  { %v143_v16 = vsel %vm1663_vm12, %v872_v55, %v1662_v34  ;;  %v516_v38 = vsub.f32 %v452_v17, %v468_v56  ;;  %v517_v13 = vsub.f32 %v453_v57, %v469_v53  ;;  %v454_v21 = vsel %vm1613_vm11, %v1664_v37, %v144_v45  ;;  %v1669_v55 = vld [vmem:[#allocation31_spill] sm:$0xff]  ;;  %vm1670_vm6 = vmmov %vm1668_vm2  ;;  %v1678_v45 = vld [vmem:[#allocation21_spill] sm:$0xff] }
  0xc4   :  { %v142_v0 = vsel %vm1666_vm4, %v1662_v34, %v1665_v54  ;;  %v203_v35 = vsel %vm1668_vm2, %v1667_v5, %v1038_v24  ;;  %v559_v28 = vcombine.low %v530_v25, %v531_v62  ;;  %v193_v27 = vsel %vm1670_vm6, %v177_v59, %v179_v10  ;;  %vm1671_vm11 = vmmov %vm1668_vm2  ;;  %v1674_v24 = vld [vmem:[#allocation22_spill] sm:$0xff]  ;;  %v1676_v17 = vld [vmem:[#allocation23_spill] sm:$0xff]  ;;  %v181_v25 = vpop.permute.xlu0 %180 }
  0xc5   :  { %v532_v31 = vmul.f32 %v516_v38, %v1669_v55  ;;  %v533_v46 = vmul.f32 %v517_v13, %v1137_v20  ;;  %v194_v51 = vsel %vm1671_vm11, %v175_v61, %v177_v59  ;;  %v455_v11 = vsel %vm1010_vm9, %v1672_v50, %v143_v16  ;;  %vm1679_vm10 = vmmov %vm1666_vm4  ;;  %v1680_v62 = vld [vmem:[#allocation20_spill] sm:$0xff]  ;;  %v183_v3 = vpop.permute.xlu1 %182  ;;  %v1686_v16 = vld [vmem:[#allocation33_spill] sm:$0xff] }
  0xc6   :  { %v587_v36 = vrot.slane %v559_v28, %v1079_v6  ;;  %vm1675_vm15 = vnez %v1674_v24  ;;  %vm1677_vm5 = vnez %v1676_v17  ;;  %v141_v47 = vsel %vm1679_vm10, %v1665_v54, %v1678_v45  ;;  %vm1681_vm9 = vmmov %vm1666_vm4  ;;  %v1688_v13 = vld [vmem:[#allocation12_spill] sm:$0xff]  ;;  %v1689_v54 = vld [vmem:[#allocation13_spill] sm:$0xff] }
  0xc7   :  { %v470_v7 = vsel %vm1675_vm15, %v1664_v37, %v194_v51  ;;  %v471_v20 = vsel %vm1677_vm5, %v1672_v50, %v193_v27  ;;  %v605_v61 = vcombine.low %v532_v31, %v533_v46  ;;  %v155_v15 = vsel %vm1681_vm9, %v1680_v62, %v835_v29  ;;  %vm1682_vm8 = vmmov %vm1666_vm4  ;;  %v1691_v55 = vld [vmem:[#allocation14_spill] sm:$0xff]  ;;  %v1692_v31 = vld [vmem:[#allocation15_spill] sm:$0xff] }
  0xc8   :  { %v518_v9 = vsub.f32 %v454_v21, %v470_v7  ;;  %v519_v40 = vsub.f32 %v455_v11, %v471_v20  ;;  %v140_v39 = vsel %vm1682_vm8, %v1678_v45, %v1680_v62  ;;  %vm1684_vm12 = vnez %v1683_v12  ;;  %vm1687_vm4 = vmmov %vm1668_vm2  ;;  %v1693_v46 = vld [vmem:[#allocation25_spill] sm:$0xff]  ;;  %v185_v23 = vpop.permute.xlu0 %184  ;;  %v1699_v24 = vld [vmem:[#allocation28_spill] sm:$0xff] }
  0xc9   :  { %v461_v57 = vsel %vm1684_vm12, %v1659_v63, %v203_v35  ;;  %v589_v56 = vcombine.low %v580_v18, %v587_v36  ;;  %v615_v53 = vrot.slane %v605_v61, %v1079_v6  ;;  %v191_v29 = vsel %vm1687_vm4, %v181_v25, %v183_v3  ;;  %v187_v50 = vpop.permute.xlu1 %186 }
  0xca   :  { %v534_v34 = vmul.f32 %v518_v9, %v1685_v43  ;;  %v535_v38 = vmul.f32 %v519_v40, %v1686_v16  ;;  %v457_v37 = vsel %vm1632_vm7, %v1688_v13, %v141_v47  ;;  %v192_v21 = vsel %vm1668_vm2, %v179_v10, %v181_v25 }
  0xcb   :  { %v473_v18 = vsel %vm1047_vm3, %v1688_v13, %v191_v29  ;;  %v603_v63 = vrot.slane %v589_v56, %v1079_v6  ;;  %v456_v35 = vsel %vm1629_vm0, %v1689_v54, %v142_v0  ;;  %vm1690_vm6 = vnez %v1566_v44  ;;  %vm1695_vm3 = vmmov %vm1668_vm2 }
  0xcc   :  { %v606_v28 = vcombine.low %v534_v34, %v535_v38  ;;  %v472_v59 = vsel %vm1690_vm6, %v1689_v54, %v192_v21  ;;  %v521_v49 = vsub.f32 %v457_v37, %v473_v18  ;;  %v459_v10 = vsel %vm1637_vm13, %v1691_v55, %v155_v15  ;;  %vm1696_vm0 = vmmov %vm1668_vm2 }
  0xcd   :  { %vm1694_vm7 = vnez %v1693_v46  ;;  %v509_v27 = vsub.f32 %v445_v30, %v461_v57  ;;  %v520_v51 = vsub.f32 %v456_v35, %v472_v59  ;;  %v204_v44 = vsel %vm1695_vm3, %v187_v50, %v1667_v5  ;;  %vm1697_vm13 = vmmov %vm1696_vm0 }
  0xce   :  { %v458_v60 = vsel %vm1694_vm7, %v1692_v31, %v140_v39  ;;  %v622_v42 = vrot.slane %v606_v28, %v1079_v6  ;;  %v537_v0 = vmul.f32 %v521_v49, %v1205_v33  ;;  %v189_v48 = vsel %vm1696_vm0, %v185_v23, %v187_v50 }
  0xcf   :  { %v536_v11 = vmul.f32 %v520_v51, %v1195_v58  ;;  %v460_v30 = vsel %vm1074_vm14, %v751_v8, %v204_v44  ;;  %v190_v36 = vsel %vm1697_vm13, %v183_v3, %v185_v23  ;;  %vm1698_vm11 = vnez %v1623_v26 }
  0xd0   :  { %v475_v33 = vsel %vm1698_vm11, %v1691_v55, %v189_v48  ;;  %v508_v5 = vsub.f32 %v444_v41, %v460_v30  ;;  %vm1700_vm15 = vnez %v1699_v24  ;;  %v637_v22 = vcombine.low %v615_v53, %v622_v42 }
  0xd1   :  { %v474_v58 = vsel %vm1700_vm15, %v1692_v31, %v190_v36  ;;  %v523_v7 = vsub.f32 %v459_v10, %v475_v33  ;;  %v607_v17 = vcombine.low %v536_v11, %v537_v0  ;;  %v525_v45 = vmul.f32 %v509_v27, %v1701_v32 }
  0xd2   :  { %v522_v20 = vsub.f32 %v458_v60, %v474_v58  ;;  %v524_v47 = vmul.f32 %v508_v5, %v1212_v52  ;;  %v645_v4 = vrot.slane %v637_v22, %v1079_v6 }
  0xd3   :  { %v539_v26 = vmul.f32 %v523_v7, %v1257_v19  ;;  %v629_v61 = vrot.slane %v607_v17, %v1079_v6 }
  0xd4   :  { %v538_v8 = vmul.f32 %v522_v20, %v1214_v2  ;;  %v556_v14 = vcombine.low %v524_v47, %v525_v45 }
  0xd6   :  { %v608_v41 = vcombine.low %v538_v8, %v539_v26  ;;  %v566_v9 = vrot.slane %v556_v14, %v1079_v6 }
  0xd8   :  { %v636_v40 = vrot.slane %v608_v41, %v1079_v6  ;;  %v588_v62 = vcombine.low %v566_v9, %v1260_v1 }
  0xda   :  { %v638_v15 = vcombine.low %v629_v61, %v636_v40  ;;  %v596_v39 = vrot.slane %v588_v62, %v1079_v6 }
  0xdc   :  { %v652_v52 = vrot.slane %v638_v15, %v1079_v6  ;;  %v604_v19 = vcombine.low %v596_v39, %v603_v63 }
  0xde   :  { %v653_v12 = vcombine.low %v645_v4, %v652_v52  ;;  %656 = vst [vmem:[#allocation5] sm:$0xff] %v604_v19 }
  0xe0   :  { %657 = vst [vmem:[#allocation5 + $0x8] sm:$0xff] %v653_v12 }
  0xe1   :  { %710 = shalt.err (!%p707_p9)
}
  0xe2   :  { %667 = dma.vmem_to_hbm [thread:$0]  %s665_s13, 256, %s1424_s1, [#allocation4]  }
  0xe3   :  { %721 = dma.done.wait [#allocation4], 256  }
  0xe4   :  { %722 = vsyncadd [#allocation4], 4294967040 }
  0xe5   :  { %671 = vsyncpa [#allocation3], 1 }
  0xe6   :  { %672 = vsyncpa [#allocation4], 1 }

</bundles_post_ra>
